<compile_context>
chip_gen: v7x
topology: tpu7x:2x2x1
jax: 0.10.0
libtpu: 0.0.40
codegen_flags: <defaults>
</compile_context>

<pallas_src>
import functools

import jax
import jax.numpy as jnp
import numpy as np
from jax import lax
from jax.experimental import pallas as pl
from jax.experimental.pallas import tpu as pltpu


def _mlp_kernel(x_ref, w1_ref, b1_ref, w2_ref, b2_ref, out_ref, *, chunk, n_chunks):
    """One (batch, spatial-slab) per grid step.

    x_ref:   VMEM (1, Cin, Tn)   input slab, spatial axis on lanes (f32)
    w1_ref:  VMEM (Chid, Cin)    fc1 weight (PyTorch (Cout, Cin) layout), bf16
    b1_ref:  VMEM (Chid, 1)      fc1 bias, f32 (broadcasts over lanes)
    w2_ref:  VMEM (Cout, Chid)   fc2 weight, bf16
    b2_ref:  VMEM (Cout, 1)      fc2 bias, f32
    out_ref: VMEM (1, Cout, Tn)  output slab (lane-dense store)
    """
    w1 = w1_ref[...]
    b1 = b1_ref[...]
    w2 = w2_ref[...]
    b2 = b2_ref[...]

    def body(c, carry):
        off = pl.multiple_of(c * chunk, chunk)
        xs = x_ref[0, :, pl.ds(off, chunk)].astype(jnp.bfloat16)       # (Cin, chunk)
        # fc1: 1x1 conv == channel matmul on the MXU, f32 accumulation.
        h = jnp.dot(w1, xs, preferred_element_type=jnp.float32) + b1   # (Chid, chunk)
        # ReLU6 (f32 on the VPU -- safe on all generations incl. v5e).
        h = jnp.minimum(jnp.maximum(h, 0.0), 6.0)
        # fc2
        y = jnp.dot(w2, h.astype(jnp.bfloat16),
                    preferred_element_type=jnp.float32) + b2           # (Cout, chunk)
        out_ref[0, :, pl.ds(off, chunk)] = y.astype(out_ref.dtype)
        return carry

    # Short static trip count; fully unrolled for LLO scheduling visibility.
    lax.fori_loop(0, n_chunks, body, 0, unroll=True)

    # TODO(synk): nn.Dropout is identity at inference (and p=0.0 by default);
    # training-mode dropout is intentionally not implemented.


def _round_up(x, m):
    return ((x + m - 1) // m) * m


def _vmem_capacity_bytes():
    """Physical VMEM per core (v5e/v6e: 128 MiB, v7x: 64 MiB); safe fallback."""
    try:
        cap = getattr(pltpu.get_tpu_info(), "vmem_capacity_bytes", None)
        if cap:
            return int(cap)
    except Exception:
        pass
    return 64 << 20  # conservative (v7x-sized) fallback


def _pick_spatial_tile(hw, n_batch, tn_cap):
    """Lane tile for the flattened spatial axis: multiple of 128, or full hw."""
    tn_cap = max(128, (tn_cap // 128) * 128)
    # Aim for >= ~4 total grid steps (v7x has 2 TensorCores; also enables
    # DMA/compute overlap) as long as tiles stay lane-dense.
    want_steps = max(1, -(-4 // n_batch))
    tn_from_steps = _round_up(max(1, -(-hw // want_steps)), 128)
    tn = min(tn_cap, tn_from_steps)
    if tn >= hw:
        return hw          # single full-extent tile (always a legal block shape)
    return tn              # multiple of 128; ragged last tile handled via pl.cdiv grid


def _pick_chunk(tn, max_chunk=4096):
    """Largest lane-dense divisor of tn (capped) -- bounds the live (Chid, chunk) h."""
    if tn <= max_chunk:
        return tn
    c = (max_chunk // 128) * 128
    while c >= 128:
        if tn % c == 0:
            return c
        c -= 128
    return tn               # no 128-multiple divisor; process the whole tile at once


def mlp_forward(x_nchw, params):
    """Mlp.forward: x (N, Cin, H, W) -> (N, Cout, H, W)."""
    N, Cin, H, W = x_nchw.shape
    w1, b1 = params["w1"], params["b1"]          # (Chid, Cin), (Chid,)
    w2, b2 = params["w2"], params["b2"]          # (Cout, Chid), (Cout,)
    Chid, Cout = w1.shape[0], w2.shape[0]
    HW = H * W

    # Free reshape: NCHW is channel-major, spatial contiguous per channel.
    x_flat = x_nchw.reshape(N, Cin, HW)

    # --- Generation-aware VMEM budgeting -----------------------------------
    vmem_cap = _vmem_capacity_bytes()
    # Leave headroom below physical VMEM (v7x: 64 MiB -> 48 MiB; v5e/v6e -> 100 MiB).
    vmem_limit = max(32 << 20, min(vmem_cap - (16 << 20), 100 << 20))

    itemsize = jnp.dtype(x_nchw.dtype).itemsize
    pad8 = lambda c: _round_up(c, 8)             # sublane padding of the channel axis
    # Double-buffered input + output slabs dominate VMEM (h is chunked).
    io_bytes_per_lane = 2 * (pad8(Cin) + pad8(Cout)) * itemsize
    tn_cap = (vmem_limit // 3) // io_bytes_per_lane
    tn_cap = min(tn_cap, 128 * 1024)             # ~4 MiB of HBM traffic per step

    Tn = _pick_spatial_tile(HW, N, tn_cap)
    n_tiles = pl.cdiv(HW, Tn)
    chunk = _pick_chunk(Tn)
    n_chunks = max(1, Tn // chunk)

    kernel = functools.partial(_mlp_kernel, chunk=chunk, n_chunks=n_chunks)

    out_flat = pl.pallas_call(
        kernel,
        out_shape=jax.ShapeDtypeStruct((N, Cout, HW), x_nchw.dtype),
        grid=(N, n_tiles),
        in_specs=[
            pl.BlockSpec((1, Cin, Tn), lambda b, j: (b, 0, j)),    # x slab
            pl.BlockSpec((Chid, Cin), lambda b, j: (0, 0)),        # fc1 weight (bf16)
            pl.BlockSpec((Chid, 1), lambda b, j: (0, 0)),          # fc1 bias (f32)
            pl.BlockSpec((Cout, Chid), lambda b, j: (0, 0)),       # fc2 weight (bf16)
            pl.BlockSpec((Cout, 1), lambda b, j: (0, 0)),          # fc2 bias (f32)
        ],
        out_specs=pl.BlockSpec((1, Cout, Tn), lambda b, j: (b, 0, j)),
        compiler_params=pltpu.CompilerParams(
            dimension_semantics=("parallel", "parallel"),
            vmem_limit_bytes=vmem_limit),
    )(x_flat,
      w1.astype(jnp.bfloat16),
      b1.reshape(Chid, 1).astype(jnp.float32),
      w2.astype(jnp.bfloat16),
      b2.reshape(Cout, 1).astype(jnp.float32))

    return out_flat.reshape(N, Cout, H, W)


def mlp_reference(x_nchw, params):
    """Pure-JAX f32 reference of the same math (for correctness check)."""
    w1, b1 = params["w1"], params["b1"]
    w2, b2 = params["w2"], params["b2"]
    h = jnp.einsum("nchw,dc->ndhw", x_nchw, w1) + b1[None, :, None, None]
    h = jnp.clip(h, 0.0, 6.0)
    return jnp.einsum("ndhw,od->nohw", h, w2) + b2[None, :, None, None]


if __name__ == "__main__":
    key = jax.random.PRNGKey(0)
    ks = jax.random.split(key, 5)

    # Shapes implied by the module: in_features=4, hidden_features=32,
    # out_features defaults to in_features.
    N, Cin, Chid, Cout = 2, 4, 32, 4
    H = W = 16

    x = jax.random.normal(ks[0], (N, Cin, H, W), jnp.float32)
    params = dict(
        w1=jax.random.normal(ks[1], (Chid, Cin), jnp.float32) * 0.2,
        b1=jax.random.normal(ks[2], (Chid,), jnp.float32) * 0.1,
        w2=jax.random.normal(ks[3], (Cout, Chid), jnp.float32) * 0.2,
        b2=jax.random.normal(ks[4], (Cout,), jnp.float32) * 0.1,
    )

    out = jax.block_until_ready(mlp_forward(x, params))
    ref = jax.block_until_ready(mlp_reference(x, params))

    assert out.shape == (N, Cout, H, W)
    # bf16 matmul operands with f32 accumulation: expect ~1% relative agreement.
    np.testing.assert_allclose(np.asarray(out), np.asarray(ref),
                               rtol=2e-2, atol=2e-2)
    print("KERNEL_OK")
</pallas_src>

<mosaic_0001>
module attributes {stable_mosaic.version = 11 : i64} {
  func.func @_mlp_kernel(%arg0: i32, %arg1: i32, %arg2: memref<1x4x128xf32, #tpu.memory_space<vmem>>, %arg3: memref<32x4xbf16, #tpu.memory_space<vmem>>, %arg4: memref<32x1xf32, #tpu.memory_space<vmem>>, %arg5: memref<4x32xbf16, #tpu.memory_space<vmem>>, %arg6: memref<4x1xf32, #tpu.memory_space<vmem>>, %arg7: memref<1x4x128xf32, #tpu.memory_space<vmem>>) attributes {dimension_semantics = [#tpu.dimension_semantics<parallel>, #tpu.dimension_semantics<parallel>], iteration_bounds = array<i64: 2, 2>, scalar_prefetch = 0 : i64, scratch_operands = 0 : i64, tpu.core_type = #tpu.core_type<tc>, window_params = [{transform_indices = @transform_0, window_bounds = array<i64: 1, 4, 128>}, {pipeline_mode = #tpu.pipeline_mode<synchronous>, transform_indices = @transform_1, window_bounds = array<i64: 32, 4>}, {pipeline_mode = #tpu.pipeline_mode<synchronous>, transform_indices = @transform_2, window_bounds = array<i64: 32, 1>}, {pipeline_mode = #tpu.pipeline_mode<synchronous>, transform_indices = @transform_3, window_bounds = array<i64: 4, 32>}, {pipeline_mode = #tpu.pipeline_mode<synchronous>, transform_indices = @transform_4, window_bounds = array<i64: 4, 1>}, {transform_indices = @transform_5, window_bounds = array<i64: 1, 4, 128>}]} {
    %c0 = arith.constant 0 : index
    %c0_0 = arith.constant 0 : index
    %0 = vector.load %arg3[%c0, %c0_0] : memref<32x4xbf16, #tpu.memory_space<vmem>>, vector<32x4xbf16>
    %c0_1 = arith.constant 0 : index
    %c0_2 = arith.constant 0 : index
    %1 = vector.load %arg4[%c0_1, %c0_2] : memref<32x1xf32, #tpu.memory_space<vmem>>, vector<32x1xf32>
    %c0_3 = arith.constant 0 : index
    %c0_4 = arith.constant 0 : index
    %2 = vector.load %arg5[%c0_3, %c0_4] : memref<4x32xbf16, #tpu.memory_space<vmem>>, vector<4x32xbf16>
    %c0_5 = arith.constant 0 : index
    %c0_6 = arith.constant 0 : index
    %3 = vector.load %arg6[%c0_5, %c0_6] : memref<4x1xf32, #tpu.memory_space<vmem>>, vector<4x1xf32>
    %c0_i32 = arith.constant 0 : i32
    %c128_i32 = arith.constant 128 : i32
    %4 = arith.muli %c0_i32, %c128_i32 : i32
    %5 = tpu.assume_multiple %4, 128 : i32
    %c0_7 = arith.constant 0 : index
    %c0_8 = arith.constant 0 : index
    %6 = arith.index_cast %5 : i32 to index
    %7 = vector.load %arg2[%c0_7, %c0_8, %6] : memref<1x4x128xf32, #tpu.memory_space<vmem>>, vector<1x4x128xf32>
    %8 = vector.shape_cast %7 : vector<1x4x128xf32> to vector<4x128xf32>
    %9 = arith.truncf %8 : vector<4x128xf32> to vector<4x128xbf16>
    %cst = arith.constant dense<0.000000e+00> : vector<32x128xf32>
    %10 = tpu.matmul %0, %9, %cst {dimension_numbers = #tpu.dot_dimension_numbers<[1], [0], [0], [1], [0, 0, 1, 1], [], []>} : vector<32x4xbf16>, vector<4x128xbf16>, vector<32x128xf32> -> vector<32x128xf32>
    %11 = vector.broadcast %1 : vector<32x1xf32> to vector<32x128xf32>
    %12 = arith.addf %10, %11 : vector<32x128xf32>
    %cst_9 = arith.constant 0.000000e+00 : f32
    %13 = vector.broadcast %cst_9 : f32 to vector<32x128xf32>
    %14 = arith.maximumf %12, %13 : vector<32x128xf32>
    %cst_10 = arith.constant 6.000000e+00 : f32
    %15 = vector.broadcast %cst_10 : f32 to vector<32x128xf32>
    %16 = arith.minimumf %14, %15 : vector<32x128xf32>
    %17 = arith.truncf %16 : vector<32x128xf32> to vector<32x128xbf16>
    %cst_11 = arith.constant dense<0.000000e+00> : vector<4x128xf32>
    %18 = tpu.matmul %2, %17, %cst_11 {dimension_numbers = #tpu.dot_dimension_numbers<[1], [0], [0], [1], [0, 0, 1, 1], [], []>} : vector<4x32xbf16>, vector<32x128xbf16>, vector<4x128xf32> -> vector<4x128xf32>
    %19 = vector.broadcast %3 : vector<4x1xf32> to vector<4x128xf32>
    %20 = arith.addf %18, %19 : vector<4x128xf32>
    %c0_12 = arith.constant 0 : index
    %c0_13 = arith.constant 0 : index
    %21 = arith.index_cast %5 : i32 to index
    %22 = vector.load %arg7[%c0_12, %c0_13, %21] : memref<1x4x128xf32, #tpu.memory_space<vmem>>, vector<1x4x128xf32>
    %23 = vector.shape_cast %22 : vector<1x4x128xf32> to vector<4x128xf32>
    %24 = vector.shape_cast %20 : vector<4x128xf32> to vector<1x4x128xf32>
    tpu.vector_store %arg7[%c0_12, %c0_13, %21], %24 {strides = array<i32>} : memref<1x4x128xf32, #tpu.memory_space<vmem>>, vector<1x4x128xf32>,
    %c1_i32 = arith.constant 1 : i32
    return
  }
  func.func @transform_0(%arg0: i32, %arg1: i32) -> (i32, i32, i32) {
    %c0_i32 = arith.constant 0 : i32
    %c0_i32_0 = arith.constant 0 : i32
    return %arg0, %c0_i32, %arg1 : i32, i32, i32
  }
  func.func @transform_1(%arg0: i32, %arg1: i32) -> (i32, i32) {
    %c0_i32 = arith.constant 0 : i32
    %c0_i32_0 = arith.constant 0 : i32
    %c0_i32_1 = arith.constant 0 : i32
    return %c0_i32, %c0_i32_0 : i32, i32
  }
  func.func @transform_2(%arg0: i32, %arg1: i32) -> (i32, i32) {
    %c0_i32 = arith.constant 0 : i32
    %c0_i32_0 = arith.constant 0 : i32
    %c0_i32_1 = arith.constant 0 : i32
    return %c0_i32, %c0_i32_0 : i32, i32
  }
  func.func @transform_3(%arg0: i32, %arg1: i32) -> (i32, i32) {
    %c0_i32 = arith.constant 0 : i32
    %c0_i32_0 = arith.constant 0 : i32
    %c0_i32_1 = arith.constant 0 : i32
    return %c0_i32, %c0_i32_0 : i32, i32
  }
  func.func @transform_4(%arg0: i32, %arg1: i32) -> (i32, i32) {
    %c0_i32 = arith.constant 0 : i32
    %c0_i32_0 = arith.constant 0 : i32
    %c0_i32_1 = arith.constant 0 : i32
    return %c0_i32, %c0_i32_0 : i32, i32
  }
  func.func @transform_5(%arg0: i32, %arg1: i32) -> (i32, i32, i32) {
    %c0_i32 = arith.constant 0 : i32
    %c0_i32_0 = arith.constant 0 : i32
    return %arg0, %c0_i32, %arg1 : i32, i32, i32
  }
}

</mosaic_0001>

<bundles_post_ra>
// kernel: tpu_custom_call.1
= control target key start
LH: loop header
LB: loop body
LE: loop exit
PB: predicated region body
PF: predicated region fallthrough
CT: control target
= control target key end

     0   :  { %10 = vsyncpa [#allocation3], 0  ;;  %s915_s0 = inlined_call_operand.vmem [shape: f32[2,4,256], index: 0, kind: input, shape index: {}]   ;;  %s916_s1 = inlined_call_operand.vmem [shape: bf16[32,4], index: 1, kind: input, shape index: {}]   ;;  %s917_s2 = inlined_call_operand.vmem [shape: f32[32,1], index: 2, kind: input, shape index: {}]   ;;  %s918_s3 = inlined_call_operand.vmem [shape: bf16[4,32], index: 3, kind: input, shape index: {}]   ;;  %s919_s4 = inlined_call_operand.vmem [shape: f32[4,1], index: 4, kind: input, shape index: {}]   ;;  %s920_s5 = inlined_call_operand.hbm [shape: f32[2,4,256], index: 5, kind: output, shape index: {}]  }
   0x1   :  { %12 = vsyncpa [#allocation3 + $0x1], 0  ;;  %s752_s18 = smov 0   ;;  %s754_s19 = smov 0  }
   0x2   :  { %s756_s20 = smov 0   ;;  %s758_s21 = smov 0  }
   0x3   :  { %s760_s22 = smov 0   ;;  %s762_s23 = smov 0  }
   0x4   :  { %s764_s24 = smov 0   ;;  %s766_s25 = smov 0  }
   0x5 LB: > { %s505_s26 = sadd.s32 4294967295, %s716_s25   ;;  %s506_s27 = sadd.s32 4294967294, %s716_s25   ;;  %s716_s25 = sphi %s766_s25, %s18_s25   ;;  %s712_s24 = sphi %s764_s24, %s935_s24   ;;  %s708_s23 = sphi %s762_s23, %s934_s23   ;;  %s704_s22 = sphi %s760_s22, %s933_s22   ;;  %s700_s21 = sphi %s758_s21, %s932_s21   ;;  %s696_s20 = sphi %s756_s20, %s931_s20   ;;  %s692_s19 = sphi %s754_s19, %s930_s19   ;;  %s688_s18 = sphi %s752_s18, %s929_s18  }
   0x6   : > { %s27_s28 = sadd.s32 1, %s708_s23  ;;  %s30_s29 = sadd.s32 1, %s712_s24 }
   0x7   : > { %p28_p0 = scmp.ge.s32.totalorder %s27_s28, 2  ;;  %p161_p1 = scmp.ne.s32.totalorder %s696_s20, %s692_s19 }
   0x8   : > { %p162_p2 = scmp.eq.s32.totalorder %s505_s26, 3  ;;  %p167_p5 = scmp.ne.s32.totalorder %s692_s19, %s688_s18 }
   0x9   : > { %s937_s28 = smov (%p28_p0, %s27_s28), 0  ;;  %s939_s29 = smov (!%p28_p0, %s30_s29), %s712_s24 }
   0xa   : > { %923 = sst [smem:[#allocation5_spill]] %s937_s28  ;;  %s147_s30 = ssub.s32 %s708_s23, %s937_s28 }
   0xb   : > { %p803_p3 = por %p162_p2, %p161_p1  ;;  %p32_p4 = scmp.ge.s32.totalorder %s939_s29, 2 }
   0xc   : > { %p168_p6 = scmp.eq.s32.totalorder %s506_s27, 3  ;;  %p509_p7 = scmp.ge.s32.totalorder %s716_s25, 1 }
   0xd   : > { %s941_s29 = smov (%p32_p4, %s939_s29), 0  ;;  %p209_p9 = scmp.lt.s32.totalorder %s716_s25, 5 }
   0xe   : > { %925 = sst [smem:[#allocation6_spill]] %s941_s29  ;;  %p812_p8 = por %p168_p6, %p167_p5 }
   0xf   : > { %s146_s8 = ssub.s32 %s712_s24, %s941_s29  ;;  %s151_s9 = sadd.s32 1, %s696_s20 }
  0x10   : > { %s148_s10 = sor.u32 %s147_s30, %s146_s8  ;;  %p210_p10 = pnand %p509_p7, %p209_p9 }
  0x11   : > { %p149_p11 = scmp.eq.s32.totalorder %s148_s10, 0  ;;  %p240_p12 = scmp.lt.s32.totalorder (!%p210_p10), %s704_s22, 1  ;;  %v620_v0 = vld [vmem:[%s916_s1] sm:$0xff] (!%p210_p10)   ;;  %vm291_vm0 = vcmask (!%p210_p10), 31744   ;;  %v718_v2 = vmov (!%p210_p10), 0   ;;  %v255_v3 = vld [vmem:[%s917_s2 + $0x10] sm:$0xff] (!%p210_p10) }
  0x12   : > { %213 = sbr.rel (%p210_p10) target bundleno = 496 (0x1f0), region = 40  ;;  %p242_p13 = scmp.lt.s32.totalorder (!%p210_p10), %s700_s21, 1  ;;  %531 = vmatprep.mubr.msk.bf16.mxu0 (!%p210_p10), %vm291_vm0, %v620_v0  ;;  %v253_v1 = vld [vmem:[%s917_s2] sm:$0xff] (!%p210_p10)  ;;  %618 = vset.pattern.permute.xlu0 (!%p210_p10), %v718_v2  ;;  %v254_v4 = vld [vmem:[%s917_s2 + $0x8] sm:$0xff] (!%p210_p10)  ;;  %v256_v5 = vld [vmem:[%s917_s2 + $0x18] sm:$0xff] (!%p210_p10)  ;;  %vm298_vm1 = vcmask (!%p210_p10), 1041408  }
  0x13   : > { %s821_s11 = scalar_select %p149_p11, %s696_s20, %s151_s9  }
  0x14   : > { %619 = vset.pattern.permute.xlu1 (!%p210_p10), %v718_v2  ;;  %263 = vperm.xlu0 (!%p210_p10), %618, %v253_v1   ;;  %v258_v8 = vld [vmem:[%s919_s4] sm:$0xf] (!%p210_p10)  ;;  %v621_v10 = vld [vmem:[%s916_s1 + $0x8] sm:$0xff] (!%p210_p10)   ;;  %v719_v11 = vmov (!%p210_p10), 0.0   ;;  %vm720_vm2 = vmmov (!%p210_p10), 0   ;;  %vm366_vm3 = vcmask (!%p210_p10), 261120  }
  0x15   : > { %273 = vperm.xlu1 (!%p210_p10), %619, %v255_v3   ;;  %535 = vmatprep.subr.bf16.mxu1 (!%p210_p10), %v719_v11  ;;  %v257_v34 = vld [vmem:[%s918_s3] sm:$0x3] (!%p210_p10)  ;;  %s519_s9 = sshll.u32 (!%p210_p10), %s704_s22, 1  ;;  %s721_s26 = smov (!%p210_p10), [#allocation2]  }
  0x16   : > { %539 = vmatprep.mubr.msk.bf16.mxu1 (!%p210_p10), %vm720_vm2, %v719_v11  ;;  %s423_s10 = sadd.s32 (!%p210_p10), %s700_s21, %s519_s9  ;;  %s626_s27 = sshll.u32 (!%p210_p10), %s721_s26, 4  ;;  %s627_s27 = int_to_ptr.vmem [resolvable:$false] %s626_s27 }
  0x17   : > { %s520_s12 = sshll.u32 (!%p210_p10), %s423_s10, 6 }
  0x18   : > { %268 = vperm.xlu0 (!%p210_p10), %618, %v254_v4  }
  0x19   : > { %s241_s14 = scalar_select %p240_p12, %s704_s22, 1  ;;  %278 = vperm.xlu1 %619, %v256_v5  }
  0x1a   : > { %s243_s17 = scalar_select %p242_p13, %s700_s21, 1 }
  0x1b   : > { %s511_s30 = sshll.u32 %s241_s14, 1 }
  0x1c   : > { %s245_s8 = sadd.s32 %s511_s30, %s243_s17  ;;  %363 = vperm.xlu0 %618, %v258_v8   ;;  %s237_s30 = sand.u32 1, %s692_s19  }
  0x1d   : > { %s512_s15 = sshll.u32 %s245_s8, 2  ;;  %s510_s8 = sshll.u32 %s237_s30, 2 }
  0x1e   : > { %s247_s28 = scalar_lea.vmem %s915_s0, %s512_s15  ;;  %s239_s13 = scalar_lea.vmem [#allocation2], %s510_s8 }
  0x1f   : > { %v259_v6 = vld [vmem:[%s247_s28] sm:$0xf]  ;;  %s427_s15 = sshll.u32 %s239_s13, 4  ;;  %s862_s17 = scalar_lea.hbm %s920_s5, %s520_s12  ;;  %s864_s15 = int_to_ptr.vmem [resolvable:$true] %s427_s15 }
  0x20   : > { %v260_v7 = vpack.c.bf16 %v259_v6, %v259_v6  ;;  %s412_s21 = scalar_lea.sflag [#allocation3], %s237_s30  ;;  %s622_s22 = scalar_lea.vmem %s864_s15, 64 }
  0x21   : > { %p623_p0 = scmp.ne.s32.totalorder %s864_s15, %s622_s22  ;;  %s628_s28 = scalar_lea.vmem %s627_s27, 128 }
  0x22   : > { %543 = vmatprep.subr.msk.bf16.mxu0 %vm298_vm1, %v260_v7  ;;  %v300_v9 = vsel %vm298_vm1, %v260_v7, 0  ;;  %p629_p4 = scmp.lt.s32.totalorder %s864_s15, %s627_s27  ;;  %p630_p5 = scmp.lt.s32.totalorder %s628_s28, %s622_s22 }
  0x23   : > { %530 = vmatpush3.bf16.msra.mxu0 %v300_v9  ;;  %p624_p1 = pnand %p623_p0, %p803_p3 }
  0x24   : > { %p631_p6 = por %p630_p5, %p629_p4 }
  0x25   : > { %p625_p2 = pneg %p624_p1 }
  0x26   : > { %532 = vmatmul.mubr.msk.bf16.vlgmr.msra.gmra.mrb[0].mxu0 %vm291_vm0, %v621_v10 }
  0x27   : > { %p632_p7 = pnand %p631_p6, %p625_p2 }
  0x93   : > { %v264_v13 = vpop.permute.xlu0 %263 }
  0x94   : > { %v274_v12 = vpop.permute.xlu1 %273 }
  0x97   : > { %v269_v20 = vpop.permute.xlu0 %268 }
  0x98   : > { %v279_v15 = vpop.permute.xlu1 %278 }
  0x9b   : > { %v364_v35 = vpop.permute.xlu0 %363 }
  0xf9   : > { %v533_v14 = vpop.f32.mrb[0].mxu0 }
  0xfa   : > { %v345_v16 = vadd.f32 %v533_v14, %v274_v12  ;;  %v336_v17 = vpop.f32.mrb[1].mxu0 }
  0xfb   : > { %v337_v18 = vadd.f32 %v336_v17, %v264_v13  ;;  %v534_v19 = vpop.f32.mrb[2].mxu0 }
  0xfc   : > { %v353_v21 = vmax.f32 %v345_v16, 0.0  ;;  %v348_v22 = vadd.f32 %v534_v19, %v279_v15  ;;  %v339_v23 = vpop.f32.mrb[3].mxu0 }
  0xfd   : > { %v351_v24 = vmax.f32 %v337_v18, 0.0  ;;  %v340_v25 = vadd.f32 %v339_v23, %v269_v20 }
  0xfe   : > { %v354_v26 = vmax.f32 %v348_v22, 0.0  ;;  %v357_v28 = vmin.f32 %v353_v21, 6.0 }
  0xff   : > { %v352_v27 = vmax.f32 %v340_v25, 0.0  ;;  %v355_v30 = vmin.f32 %v351_v24, 6.0 }
 0x100   : > { %v358_v29 = vmin.f32 %v354_v26, 6.0 }
 0x101   : > { %v356_v31 = vmin.f32 %v352_v27, 6.0 }
 0x102   : > { %v360_v32 = vpack.c.bf16 %v358_v29, %v357_v28 }
 0x103   : > { %v359_v33 = vpack.c.bf16 %v356_v31, %v355_v30 }
 0x105   : > { %536 = vmatpush3.bf16.msra.mxu1 %v359_v33 }
 0x106   : > { %537 = vmatprep.subr.bf16.mxu1 %v719_v11 }
 0x109   : > { %538 = vmatpush3.bf16.msra.mxu1 %v360_v32 }
 0x10c   : > { %540 = vmatmul.mubr.msk.bf16.vlgmr.msra.gmra.mrb[0].mxu1 %vm366_vm3, %v257_v34 }
 0x1df   : > { %v404_v36 = vpop.f32.mrb[0].mxu1 }
 0x1e0   : > { %v405_v37 = vadd.f32 %v404_v36, %v364_v35  ;;  %v541_v38 = vpop.f32.mrb[1].mxu1 }
 0x1e1   : > { %v407_v39 = vpop.f32.mrb[2].mxu1 }
 0x1e2   : > { %410 = vst [vmem:[%s239_s13] sm:$0xf] %v405_v37  ;;  %v542_v40 = vpop.f32.mrb[3].mxu1 }
 0x1e3   : > { %635 = shalt.err (!%p632_p7)
}
 0x1e4   : > { %s636_s29 = scalar_lea.hbm %s862_s17, 64  ;;  %s640_s9 = scalar_lea.hbm %s920_s5, 256 }
 0x1e5   : > { %p637_p9 = scmp.ne.s32.totalorder %s862_s17, %s636_s29  ;;  %p641_p12 = scmp.lt.u32.totalorder %s862_s17, %s920_s5 }
 0x1e6   : > { %p642_p13 = scmp.lt.u32.totalorder %s640_s9, %s636_s29  ;;  %p644_p1 = scmp.lt.u32.totalorder %s636_s29, %s862_s17 }
 0x1e7   : > { %p638_p10 = pnand %p637_p9, %p803_p3 }
 0x1e8   : > { %p643_p0 = por %p642_p13, %p641_p12 }
 0x1e9   : > { %p639_p11 = pneg %p638_p10 }
 0x1ea   : > { %p645_p2 = por %p644_p1, %p643_p0 }
 0x1ec   : > { %p646_p4 = pnand %p645_p2, %p639_p11 }
 0x1ee   : > { %649 = shalt.err (!%p646_p4)
}
 0x1ef   : > { %544 = dma.vmem_to_hbm [thread:$0]  (%p803_p3), %s864_s15, 64, %s862_s17, %s412_s21  }
 0x1f0 PF: > { %p550_p5 = scmp.ge.s32.totalorder %s716_s25, 2  ;;  %s439_s13 = sand.u32 1, %s688_s18  }
 0x1f1   : > { %s440_s16 = scalar_lea.sflag [#allocation3], %s439_s13 }
 0x1f2   : > { %p547_p6 = pnand %p550_p5, %p812_p8 }
 0x1f4   : > { %683 = dma.done.wait (!%p547_p6), %s440_s16, 64  }
 0x1f5   : > { %685 = vsyncadd (!%p547_p6), %s440_s16, 4294967232  ;;  %s18_s25 = sadd.s32 1, %s716_s25   ;;  %s927_s6 = sld [smem:[#allocation5_spill]] }
 0x1f6   : > { %p15_p7 = scmp.ge.s32.totalorder %s18_s25, 6   ;;  %s928_s15 = sld [smem:[#allocation6_spill]] }
 0x1f7   : > { %s929_s18 = smov %s692_s19  ;;  %s930_s19 = smov %s696_s20 }
 0x1f8   : > { %s931_s20 = smov %s821_s11  ;;  %s932_s21 = smov %s708_s23 }
 0x1f9   : > { %s933_s22 = smov %s712_s24  ;;  %17 = sbr.rel (!%p15_p7) target bundleno = 5 (0x5), region = 75 }
 0x1fb   : > { %s934_s23 = smov %s927_s6 }
 0x1fc   : > { %s935_s24 = smov %s928_s15 }
 0x200   :  { %445 = vsyncpa [#allocation3], 1 }
 0x201   :  { %447 = vsyncpa [#allocation3 + $0x1], 1 }

</bundles_post_ra>
